<compile_context>
chip_gen: v5e
topology: v5e:2x2
jax: 0.10.0
libtpu: 0.0.40
codegen_flags: <defaults>
</compile_context>

<pallas_src>
import functools

import jax
import jax.numpy as jnp
from jax.experimental import pallas as pl
from jax.experimental.pallas import tpu as pltpu

KERNEL_SIZE = 3
PADDING = 1
STRIDE = 1


def _avgpool_kernel(x_ref, o_ref, xp_ref, *, H, W, H_out, W_out, k, pad,
                    stride):
    # x_ref : (H, W, Bp)            input block, planes on lanes
    # o_ref : (H_out, W_out, Bp)    output block
    # xp_ref: (H+2p, W+2p, Bp) f32  zero-padded VMEM scratch (persists across
    #                               grid steps; border stays zero after step 0)
    @pl.when(pl.program_id(0) == 0)
    def _zero_border():
        xp_ref[...] = jnp.zeros_like(xp_ref)

    xp_ref[pad:pad + H, pad:pad + W, :] = x_ref[...].astype(jnp.float32)
    xp = xp_ref[...]

    # Separable box filter (k, pad, stride are static Python ints; stride=1).
    w_lim = (W_out - 1) * stride + 1
    tmp = xp[:, 0:w_lim:stride, :]
    for dj in range(1, k):
        tmp = tmp + xp[:, dj:dj + w_lim:stride, :]

    h_lim = (H_out - 1) * stride + 1
    acc = tmp[0:h_lim:stride, :, :]
    for di in range(1, k):
        acc = acc + tmp[di:di + h_lim:stride, :, :]

    o_ref[...] = (acc * (1.0 / float(k * k))).astype(o_ref.dtype)


def _choose_plane_block(P, H, W, pad, budget_bytes=12 * 1024 * 1024):
    """Planes per block: big enough to amortize per-step overhead, small
    enough that 2x double-buffered in + 2x out + padded scratch (all f32)
    stay under the smallest default scoped-VMEM budget (v5e: 16 MiB)."""
    bytes_per_plane = (2 * H * W + 2 * H * W + (H + 2 * pad) * (W + 2 * pad)) * 4
    max_bp = max(128, (budget_bytes // max(bytes_per_plane, 1)) // 128 * 128)
    if P <= max_bp:
        return P                      # full plane axis -> always a legal block
    return min(512, max_bp)           # multiple of 128; ragged tail is masked


def avgpool2d(x, kernel_size=KERNEL_SIZE, padding=PADDING, stride=STRIDE):
    """x: (N, C, H, W) -> (N, C, H_out, W_out), matching nn.AvgPool2d with
    count_include_pad=True (the PyTorch default)."""
    N, C, H, W = x.shape
    H_out = (H + 2 * padding - kernel_size) // stride + 1
    W_out = (W + 2 * padding - kernel_size) // stride + 1
    P = N * C

    # Layout plumbing only: planes onto the 128-lane axis.
    xt = jnp.transpose(x.reshape(P, H, W), (1, 2, 0))           # (H, W, P)

    Bp = _choose_plane_block(P, H, W, padding)
    grid_p = pl.cdiv(P, Bp)

    kernel = functools.partial(
        _avgpool_kernel, H=H, W=W, H_out=H_out, W_out=W_out,
        k=kernel_size, pad=padding, stride=stride)

    out_t = pl.pallas_call(
        kernel,
        out_shape=jax.ShapeDtypeStruct((H_out, W_out, P), x.dtype),
        grid_spec=pltpu.PrefetchScalarGridSpec(
            num_scalar_prefetch=0,
            grid=(grid_p,),
            in_specs=[pl.BlockSpec((H, W, Bp), lambda p: (0, 0, p))],
            out_specs=pl.BlockSpec((H_out, W_out, Bp), lambda p: (0, 0, p)),
            scratch_shapes=[
                pltpu.VMEM((H + 2 * padding, W + 2 * padding, Bp),
                           jnp.float32)
            ],
        ),
        compiler_params=pltpu.CompilerParams(
            dimension_semantics=("parallel",)),
    )(xt)

    # Back to NCHW.
    return jnp.transpose(out_t, (2, 0, 1)).reshape(N, C, H_out, W_out)


def _reference_avgpool2d(x, kernel_size=KERNEL_SIZE, padding=PADDING,
                         stride=STRIDE):
    # Pure-JAX reference (same semantics as nn.AvgPool2d default flags).
    N, C, H, W = x.shape
    H_out = (H + 2 * padding - kernel_size) // stride + 1
    W_out = (W + 2 * padding - kernel_size) // stride + 1
    xp = jnp.pad(x, ((0, 0), (0, 0), (padding, padding), (padding, padding)))
    acc = jnp.zeros((N, C, H_out, W_out), jnp.float32)
    for di in range(kernel_size):
        for dj in range(kernel_size):
            acc = acc + xp[:, :, di:di + H_out * stride:stride,
                           dj:dj + W_out * stride:stride]
    return (acc / float(kernel_size * kernel_size)).astype(x.dtype)


if __name__ == "__main__":
    key = jax.random.PRNGKey(0)
    x = jax.random.normal(key, (2, 4, 16, 16), dtype=jnp.float32)

    out = jax.block_until_ready(avgpool2d(x))

    ref = _reference_avgpool2d(x)
    assert out.shape == (2, 4, 16, 16), out.shape
    assert jnp.allclose(out, ref, atol=1e-5, rtol=1e-5)

    print("KERNEL_OK")
</pallas_src>

<mosaic_0001>
module attributes {stable_mosaic.version = 11 : i64} {
  func.func @_avgpool_kernel(%arg0: i32, %arg1: memref<16x16x8xf32, #tpu.memory_space<vmem>>, %arg2: memref<16x16x8xf32, #tpu.memory_space<vmem>>, %arg3: memref<18x18x8xf32, #tpu.memory_space<vmem>>) attributes {dimension_semantics = [#tpu.dimension_semantics<parallel>], iteration_bounds = array<i64: 1>, scalar_prefetch = 0 : i64, scratch_operands = 1 : i64, tpu.core_type = #tpu.core_type<tc>, window_params = [{transform_indices = @transform_0, window_bounds = array<i64: 16, 16, 8>}, {transform_indices = @transform_1, window_bounds = array<i64: 16, 16, 8>}]} {
    %c0_i32 = arith.constant 0 : i32
    %0 = arith.cmpi eq, %arg0, %c0_i32 : i32
    %1 = arith.extui %0 : i1 to i32
    %c0_i32_0 = arith.constant 0 : i32
    %2 = arith.cmpi ne, %1, %c0_i32_0 : i32
    scf.if %2 {
      %cst_11 = arith.constant 0.000000e+00 : f32
      %19 = vector.broadcast %cst_11 : f32 to vector<18x18x8xf32>
      %c0_12 = arith.constant 0 : index
      %c0_13 = arith.constant 0 : index
      %c0_14 = arith.constant 0 : index
      %20 = vector.load %arg3[%c0_12, %c0_13, %c0_14] : memref<18x18x8xf32, #tpu.memory_space<vmem>>, vector<18x18x8xf32>
      tpu.vector_store %arg3[%c0_12, %c0_13, %c0_14], %19 {strides = array<i32>} : memref<18x18x8xf32, #tpu.memory_space<vmem>>, vector<18x18x8xf32>,
    } else {
    }
    %c0 = arith.constant 0 : index
    %c0_1 = arith.constant 0 : index
    %c0_2 = arith.constant 0 : index
    %3 = vector.load %arg1[%c0, %c0_1, %c0_2] : memref<16x16x8xf32, #tpu.memory_space<vmem>>, vector<16x16x8xf32>
    %c1 = arith.constant 1 : index
    %c1_3 = arith.constant 1 : index
    %c0_4 = arith.constant 0 : index
    %4 = vector.load %arg3[%c1, %c1_3, %c0_4] : memref<18x18x8xf32, #tpu.memory_space<vmem>>, vector<16x16x8xf32>
    tpu.vector_store %arg3[%c1, %c1_3, %c0_4], %3 {strides = array<i32>} : memref<18x18x8xf32, #tpu.memory_space<vmem>>, vector<16x16x8xf32>,
    %c0_5 = arith.constant 0 : index
    %c0_6 = arith.constant 0 : index
    %c0_7 = arith.constant 0 : index
    %5 = vector.load %arg3[%c0_5, %c0_6, %c0_7] : memref<18x18x8xf32, #tpu.memory_space<vmem>>, vector<18x18x8xf32>
    %6 = vector.extract_strided_slice %5 {offsets = [0, 0, 0], sizes = [18, 16, 8], strides = [1, 1, 1]} : vector<18x18x8xf32> to vector<18x16x8xf32>
    %7 = vector.extract_strided_slice %5 {offsets = [0, 1, 0], sizes = [18, 16, 8], strides = [1, 1, 1]} : vector<18x18x8xf32> to vector<18x16x8xf32>
    %8 = arith.addf %6, %7 : vector<18x16x8xf32>
    %9 = vector.extract_strided_slice %5 {offsets = [0, 2, 0], sizes = [18, 16, 8], strides = [1, 1, 1]} : vector<18x18x8xf32> to vector<18x16x8xf32>
    %10 = arith.addf %8, %9 : vector<18x16x8xf32>
    %11 = vector.extract_strided_slice %10 {offsets = [0, 0, 0], sizes = [16, 16, 8], strides = [1, 1, 1]} : vector<18x16x8xf32> to vector<16x16x8xf32>
    %12 = vector.extract_strided_slice %10 {offsets = [1, 0, 0], sizes = [16, 16, 8], strides = [1, 1, 1]} : vector<18x16x8xf32> to vector<16x16x8xf32>
    %13 = arith.addf %11, %12 : vector<16x16x8xf32>
    %14 = vector.extract_strided_slice %10 {offsets = [2, 0, 0], sizes = [16, 16, 8], strides = [1, 1, 1]} : vector<18x16x8xf32> to vector<16x16x8xf32>
    %15 = arith.addf %13, %14 : vector<16x16x8xf32>
    %cst = arith.constant 0.111111112 : f32
    %16 = vector.broadcast %cst : f32 to vector<16x16x8xf32>
    %17 = arith.mulf %15, %16 : vector<16x16x8xf32>
    %c0_8 = arith.constant 0 : index
    %c0_9 = arith.constant 0 : index
    %c0_10 = arith.constant 0 : index
    %18 = vector.load %arg2[%c0_8, %c0_9, %c0_10] : memref<16x16x8xf32, #tpu.memory_space<vmem>>, vector<16x16x8xf32>
    tpu.vector_store %arg2[%c0_8, %c0_9, %c0_10], %17 {strides = array<i32>} : memref<16x16x8xf32, #tpu.memory_space<vmem>>, vector<16x16x8xf32>,
    return
  }
  func.func @transform_0(%arg0: i32) -> (i32, i32, i32) {
    %c0_i32 = arith.constant 0 : i32
    %c0_i32_0 = arith.constant 0 : i32
    %c0_i32_1 = arith.constant 0 : i32
    return %c0_i32, %c0_i32_0, %arg0 : i32, i32, i32
  }
  func.func @transform_1(%arg0: i32) -> (i32, i32, i32) {
    %c0_i32 = arith.constant 0 : i32
    %c0_i32_0 = arith.constant 0 : i32
    %c0_i32_1 = arith.constant 0 : i32
    return %c0_i32, %c0_i32_0, %arg0 : i32, i32, i32
  }
}

</mosaic_0001>

<bundles_post_ra>
// kernel: tpu_custom_call.1
= control target key start
LH: loop header
LB: loop body
LE: loop exit
PB: predicated region body
PF: predicated region fallthrough
CT: control target
= control target key end

     0   :  { %vm12_vm0 = vcmask 64512   ;;  %v701_v0 = vmov 0.0   ;;  %vm15_vm1 = vcmask 58368   ;;  %vm242_vm2 = vcmask 1046528   ;;  %s1100_s0 = inlined_call_operand.vmem [shape: f32[16,16,8], index: 0, kind: input, shape index: {}]   ;;  %s1101_s1 = inlined_call_operand.vmem [shape: f32[16,16,8], index: 1, kind: output, shape index: {}]  }
   0x1   :  { %13 = vst.msk [vmem:[#allocation2] sm:$0xff] %vm12_vm0, %v701_v0  ;;  %v68_v1 = vld [vmem:[%s1100_s0] sm:$0xff]  ;;  %v69_v2 = vld [vmem:[%s1100_s0 + $0x8] sm:$0xff]  ;;  %v70_v3 = vld [vmem:[%s1100_s0 + $0x10] sm:$0xff]  ;;  %vm405_vm3 = vcmask 1045504  }
   0x2   :  { %14 = vst.msk [vmem:[#allocation2 + $0x8] sm:$0xff] %vm12_vm0, %v701_v0  ;;  %v71_v6 = vld [vmem:[%s1100_s0 + $0x18] sm:$0xff]  ;;  %v72_v9 = vld [vmem:[%s1100_s0 + $0x20] sm:$0xff]  ;;  %v73_v11 = vld [vmem:[%s1100_s0 + $0x28] sm:$0xff] }
   0x3   :  { %17 = vst.msk [vmem:[#allocation2 + $0x18] sm:$0xff] %vm12_vm0, %v701_v0  ;;  %v74_v13 = vld [vmem:[%s1100_s0 + $0x30] sm:$0xff]  ;;  %v75_v18 = vld [vmem:[%s1100_s0 + $0x38] sm:$0xff]  ;;  %v76_v20 = vld [vmem:[%s1100_s0 + $0x40] sm:$0xff] }
   0x4   :  { %18 = vst.msk [vmem:[#allocation2 + $0x20] sm:$0xff] %vm12_vm0, %v701_v0  ;;  %v77_v21 = vld [vmem:[%s1100_s0 + $0x48] sm:$0xff]  ;;  %v78_v22 = vld [vmem:[%s1100_s0 + $0x50] sm:$0xff]  ;;  %v79_v25 = vld [vmem:[%s1100_s0 + $0x58] sm:$0xff] }
   0x5   :  { %20 = vst.msk [vmem:[#allocation2 + $0x30] sm:$0xff] %vm12_vm0, %v701_v0  ;;  %v80_v26 = vld [vmem:[%s1100_s0 + $0x60] sm:$0xff]  ;;  %v81_v30 = vld [vmem:[%s1100_s0 + $0x68] sm:$0xff]  ;;  %v82_v46 = vld [vmem:[%s1100_s0 + $0x70] sm:$0xff] }
   0x6   :  { %21 = vst.msk [vmem:[#allocation2 + $0x38] sm:$0xff] %vm12_vm0, %v701_v0  ;;  %v83_v52 = vld [vmem:[%s1100_s0 + $0x78] sm:$0xff]  ;;  %v84_v58 = vld [vmem:[%s1100_s0 + $0x80] sm:$0xff]  ;;  %v85_v63 = vld [vmem:[%s1100_s0 + $0x88] sm:$0xff] }
   0x7   :  { %23 = vst.msk [vmem:[#allocation2 + $0x48] sm:$0xff] %vm12_vm0, %v701_v0 }
   0x8   :  { %24 = vst.msk [vmem:[#allocation2 + $0x50] sm:$0xff] %vm12_vm0, %v701_v0  ;;  %v134_v4 = vld [vmem:[#allocation2] sm:$0xff] }
   0x9   :  { %26 = vst.msk [vmem:[#allocation2 + $0x60] sm:$0xff] %vm12_vm0, %v701_v0  ;;  %v135_v5 = vld [vmem:[#allocation2 + $0x8] sm:$0xff]  ;;  %v243_v7 = vrot.slane %v134_v4, 1  ;;  %v406_v15 = vrot.slane %v134_v4, 2 }
   0xa   :  { %27 = vst.msk [vmem:[#allocation2 + $0x68] sm:$0xff] %vm12_vm0, %v701_v0  ;;  %v244_v8 = vrot.slane %v135_v5, 1  ;;  %v407_v16 = vrot.slane %v135_v5, 2 }
   0xb   :  { %29 = vst.msk [vmem:[#allocation2 + $0x78] sm:$0xff] %vm12_vm0, %v701_v0 }
   0xc   :  { %30 = vst.msk [vmem:[#allocation2 + $0x80] sm:$0xff] %vm12_vm0, %v701_v0  ;;  %v245_v14 = vsel %vm242_vm2, %v243_v7, %v244_v8  ;;  %v408_v28 = vsel %vm405_vm3, %v406_v15, %v407_v16  ;;  %v88_v15 = vld [vmem:[%s1100_s0 + $0xa0] sm:$0xff] }
   0xd   :  { %32 = vst.msk [vmem:[#allocation2 + $0x90] sm:$0xff] %vm12_vm0, %v701_v0  ;;  %v369_v23 = vadd.f32 %v245_v14, %v134_v4 }
   0xe   :  { %33 = vst.msk [vmem:[#allocation2 + $0x98] sm:$0xff] %vm12_vm0, %v701_v0 }
   0xf   :  { %35 = vst.msk [vmem:[#allocation2 + $0xa8] sm:$0xff] %vm12_vm0, %v701_v0  ;;  %v532_v43 = vadd.f32 %v408_v28, %v369_v23 }
  0x10   :  { %36 = vst.msk [vmem:[#allocation2 + $0xb0] sm:$0xff] %vm12_vm0, %v701_v0 }
  0x11   :  { %38 = vst.msk [vmem:[#allocation2 + $0xc0] sm:$0xff] %vm12_vm0, %v701_v0 }
  0x12   :  { %39 = vst.msk [vmem:[#allocation2 + $0xc8] sm:$0xff] %vm12_vm0, %v701_v0 }
  0x13   :  { %41 = vst.msk [vmem:[#allocation2 + $0xd8] sm:$0xff] %vm12_vm0, %v701_v0 }
  0x14   :  { %42 = vst.msk [vmem:[#allocation2 + $0xe0] sm:$0xff] %vm12_vm0, %v701_v0 }
  0x15   :  { %44 = vst.msk [vmem:[#allocation2 + $0xf0] sm:$0xff] %vm12_vm0, %v701_v0 }
  0x16   :  { %45 = vst.msk [vmem:[#allocation2 + $0xf8] sm:$0xff] %vm12_vm0, %v701_v0 }
  0x17   :  { %47 = vst.msk [vmem:[#allocation2 + $0x108] sm:$0xff] %vm12_vm0, %v701_v0 }
  0x18   :  { %48 = vst.msk [vmem:[#allocation2 + $0x110] sm:$0xff] %vm12_vm0, %v701_v0 }
  0x19   :  { %50 = vst.msk [vmem:[#allocation2 + $0x120] sm:$0xff] %vm12_vm0, %v701_v0 }
  0x1a   :  { %51 = vst.msk [vmem:[#allocation2 + $0x128] sm:$0xff] %vm12_vm0, %v701_v0 }
  0x1b   :  { %53 = vst.msk [vmem:[#allocation2 + $0x138] sm:$0xff] %vm12_vm0, %v701_v0 }
  0x1c   :  { %54 = vst.msk [vmem:[#allocation2 + $0x140] sm:$0xff] %vm12_vm0, %v701_v0 }
  0x1d   :  { %56 = vst.msk [vmem:[#allocation2 + $0x150] sm:$0xff] %vm12_vm0, %v701_v0 }
  0x1e   :  { %57 = vst.msk [vmem:[#allocation2 + $0x158] sm:$0xff] %vm12_vm0, %v701_v0 }
  0x1f   :  { %59 = vst.msk [vmem:[#allocation2 + $0x168] sm:$0xff] %vm12_vm0, %v701_v0 }
  0x20   :  { %60 = vst.msk [vmem:[#allocation2 + $0x170] sm:$0xff] %vm12_vm0, %v701_v0 }
  0x21   :  { %62 = vst.msk [vmem:[#allocation2 + $0x180] sm:$0xff] %vm12_vm0, %v701_v0 }
  0x22   :  { %63 = vst.msk [vmem:[#allocation2 + $0x188] sm:$0xff] %vm12_vm0, %v701_v0 }
  0x23   :  { %65 = vst.msk [vmem:[#allocation2 + $0x198] sm:$0xff] %vm12_vm0, %v701_v0 }
  0x24   :  { %66 = vst.msk [vmem:[#allocation2 + $0x1a0] sm:$0xff] %vm12_vm0, %v701_v0 }
  0x25   :  { %16 = vst.msk [vmem:[#allocation2 + $0x10] sm:$0x3] %vm15_vm1, %v701_v0 }
  0x26   :  { %19 = vst.msk [vmem:[#allocation2 + $0x28] sm:$0x3] %vm15_vm1, %v701_v0 }
  0x27   :  { %22 = vst.msk [vmem:[#allocation2 + $0x40] sm:$0x3] %vm15_vm1, %v701_v0 }
  0x28   :  { %25 = vst.msk [vmem:[#allocation2 + $0x58] sm:$0x3] %vm15_vm1, %v701_v0 }
  0x29   :  { %28 = vst.msk [vmem:[#allocation2 + $0x70] sm:$0x3] %vm15_vm1, %v701_v0 }
  0x2a   :  { %31 = vst.msk [vmem:[#allocation2 + $0x88] sm:$0x3] %vm15_vm1, %v701_v0 }
  0x2b   :  { %34 = vst.msk [vmem:[#allocation2 + $0xa0] sm:$0x3] %vm15_vm1, %v701_v0 }
  0x2c   :  { %37 = vst.msk [vmem:[#allocation2 + $0xb8] sm:$0x3] %vm15_vm1, %v701_v0  ;;  %v136_v10 = vld [vmem:[#allocation2 + $0x10] sm:$0x3] }
  0x2d   :  { %40 = vst.msk [vmem:[#allocation2 + $0xd0] sm:$0x3] %vm15_vm1, %v701_v0  ;;  %v246_v12 = vrot.slane %v136_v10, 1  ;;  %v409_v17 = vrot.slane %v136_v10, 2  ;;  %v87_v10 = vld [vmem:[%s1100_s0 + $0x98] sm:$0xff] }
  0x2e   :  { %43 = vst.msk [vmem:[#allocation2 + $0xe8] sm:$0x3] %vm15_vm1, %v701_v0 }
  0x2f   :  { %46 = vst.msk [vmem:[#allocation2 + $0x100] sm:$0x3] %vm15_vm1, %v701_v0  ;;  %v247_v19 = vsel %vm242_vm2, %v244_v8, %v246_v12  ;;  %v410_v29 = vsel %vm405_vm3, %v407_v16, %v409_v17 }
  0x30   :  { %49 = vst.msk [vmem:[#allocation2 + $0x118] sm:$0x3] %vm15_vm1, %v701_v0  ;;  %v370_v24 = vadd.f32 %v247_v19, %v135_v5  ;;  %v86_v5 = vld [vmem:[%s1100_s0 + $0x90] sm:$0xff] }
  0x31   :  { %52 = vst.msk [vmem:[#allocation2 + $0x130] sm:$0x3] %vm15_vm1, %v701_v0 }
  0x32   :  { %55 = vst.msk [vmem:[#allocation2 + $0x148] sm:$0x3] %vm15_vm1, %v701_v0  ;;  %v533_v45 = vadd.f32 %v410_v29, %v370_v24 }
  0x33   :  { %58 = vst.msk [vmem:[#allocation2 + $0x160] sm:$0x3] %vm15_vm1, %v701_v0 }
  0x34   :  { %61 = vst.msk [vmem:[#allocation2 + $0x178] sm:$0x3] %vm15_vm1, %v701_v0 }
  0x35   :  { %64 = vst.msk [vmem:[#allocation2 + $0x190] sm:$0x3] %vm15_vm1, %v701_v0 }
  0x36   :  { %67 = vst.msk [vmem:[#allocation2 + $0x1a8] sm:$0x3] %vm15_vm1, %v701_v0 }
  0x37   :  { %102 = vst.msk [vmem:[#allocation2 + $0x19] sm:$0xff] %vm12_vm0, %v68_v1 }
  0x38   :  { %103 = vst.msk [vmem:[#allocation2 + $0x21] sm:$0xff] %vm12_vm0, %v69_v2 }
  0x39   :  { %104 = vst.msk [vmem:[#allocation2 + $0x31] sm:$0xff] %vm12_vm0, %v70_v3 }
  0x3a   :  { %105 = vst.msk [vmem:[#allocation2 + $0x39] sm:$0xff] %vm12_vm0, %v71_v6 }
  0x3b   :  { %106 = vst.msk [vmem:[#allocation2 + $0x49] sm:$0xff] %vm12_vm0, %v72_v9 }
  0x3c   :  { %107 = vst.msk [vmem:[#allocation2 + $0x51] sm:$0xff] %vm12_vm0, %v73_v11 }
  0x3d   :  { %108 = vst.msk [vmem:[#allocation2 + $0x61] sm:$0xff] %vm12_vm0, %v74_v13 }
  0x3e   :  { %109 = vst.msk [vmem:[#allocation2 + $0x69] sm:$0xff] %vm12_vm0, %v75_v18  ;;  %v137_v27 = vld [vmem:[#allocation2 + $0x18] sm:$0xff] }
  0x3f   :  { %110 = vst.msk [vmem:[#allocation2 + $0x79] sm:$0xff] %vm12_vm0, %v76_v20  ;;  %v138_v31 = vld [vmem:[#allocation2 + $0x20] sm:$0xff]  ;;  %v248_v32 = vrot.slane %v137_v27, 1  ;;  %v411_v33 = vrot.slane %v137_v27, 2  ;;  %v139_v34 = vld [vmem:[#allocation2 + $0x28] sm:$0x3] }
  0x40   :  { %111 = vst.msk [vmem:[#allocation2 + $0x81] sm:$0xff] %vm12_vm0, %v77_v21  ;;  %v140_v35 = vld [vmem:[#allocation2 + $0x30] sm:$0xff]  ;;  %v249_v36 = vrot.slane %v138_v31, 1  ;;  %v412_v37 = vrot.slane %v138_v31, 2  ;;  %v251_v38 = vrot.slane %v139_v34, 1  ;;  %v414_v39 = vrot.slane %v139_v34, 2 }
  0x41   :  { %112 = vst.msk [vmem:[#allocation2 + $0x91] sm:$0xff] %vm12_vm0, %v78_v22  ;;  %v141_v40 = vld [vmem:[#allocation2 + $0x38] sm:$0xff]  ;;  %v253_v41 = vrot.slane %v140_v35, 1  ;;  %v416_v42 = vrot.slane %v140_v35, 2  ;;  %v142_v44 = vld [vmem:[#allocation2 + $0x40] sm:$0x3] }
  0x42   :  { %113 = vst.msk [vmem:[#allocation2 + $0x99] sm:$0xff] %vm12_vm0, %v79_v25  ;;  %v250_v47 = vsel %vm242_vm2, %v248_v32, %v249_v36  ;;  %v254_v48 = vrot.slane %v141_v40, 1  ;;  %v413_v49 = vsel %vm405_vm3, %v411_v33, %v412_v37  ;;  %v417_v50 = vrot.slane %v141_v40, 2  ;;  %v143_v51 = vld [vmem:[#allocation2 + $0x48] sm:$0xff]  ;;  %v91_v33 = vld [vmem:[%s1100_s0 + $0xb8] sm:$0xff] }
  0x43   :  { %114 = vst.msk [vmem:[#allocation2 + $0xa9] sm:$0xff] %vm12_vm0, %v80_v26  ;;  %v371_v53 = vadd.f32 %v250_v47, %v137_v27  ;;  %v252_v54 = vsel %vm242_vm2, %v249_v36, %v251_v38  ;;  %v256_v55 = vrot.slane %v142_v44, 1  ;;  %v415_v56 = vsel %vm405_vm3, %v412_v37, %v414_v39  ;;  %v144_v57 = vld [vmem:[#allocation2 + $0x50] sm:$0xff]  ;;  %v145_v4 = vld [vmem:[#allocation2 + $0x58] sm:$0x3]  ;;  %v89_v21 = vld [vmem:[%s1100_s0 + $0xa8] sm:$0xff] }
  0x44   :  { %115 = vst.msk [vmem:[#allocation2 + $0xb1] sm:$0xff] %vm12_vm0, %v81_v30  ;;  %v255_v59 = vsel %vm242_vm2, %v253_v41, %v254_v48  ;;  %v418_v60 = vsel %vm405_vm3, %v416_v42, %v417_v50  ;;  %v372_v61 = vadd.f32 %v252_v54, %v138_v31  ;;  %v419_v62 = vrot.slane %v142_v44, 2  ;;  %v146_v20 = vld [vmem:[#allocation2 + $0x60] sm:$0xff]  ;;  %v90_v27 = vld [vmem:[%s1100_s0 + $0xb0] sm:$0xff]  ;;  %v93_v44 = vld [vmem:[%s1100_s0 + $0xc8] sm:$0xff] }
  0x45   :  { %116 = vst.msk [vmem:[#allocation2 + $0xc1] sm:$0xff] %vm12_vm0, %v82_v46  ;;  %v373_v0 = vadd.f32 %v255_v59, %v140_v35  ;;  %v534_v1 = vadd.f32 %v413_v49, %v371_v53  ;;  %v257_v2 = vsel %vm242_vm2, %v254_v48, %v256_v55  ;;  %v258_v3 = vrot.slane %v143_v51, 1  ;;  %v147_v26 = vld [vmem:[#allocation2 + $0x68] sm:$0xff]  ;;  %v148_v32 = vld [vmem:[#allocation2 + $0x70] sm:$0x3]  ;;  %v92_v39 = vld [vmem:[%s1100_s0 + $0xc0] sm:$0xff] }
  0x46   :  { %117 = vst.msk [vmem:[#allocation2 + $0xc9] sm:$0xff] %vm12_vm0, %v83_v52  ;;  %v374_v6 = vadd.f32 %v257_v2, %v141_v40  ;;  %v420_v7 = vsel %vm405_vm3, %v417_v50, %v419_v62  ;;  %v535_v8 = vadd.f32 %v415_v56, %v372_v61  ;;  %v259_v9 = vrot.slane %v144_v57, 1  ;;  %v149_v38 = vld [vmem:[#allocation2 + $0x78] sm:$0xff]  ;;  %v94_v50 = vld [vmem:[%s1100_s0 + $0xd0] sm:$0xff]  ;;  %v96_v61 = vld [vmem:[%s1100_s0 + $0xe0] sm:$0xff] }
  0x47   :  { %118 = vst.msk [vmem:[#allocation2 + $0xd9] sm:$0xff] %vm12_vm0, %v84_v58  ;;  %v536_v11 = vadd.f32 %v418_v60, %v373_v0  ;;  %v568_v12 = vadd.f32 %v534_v1, %v532_v43  ;;  %v421_v13 = vrot.slane %v143_v51, 2  ;;  %v422_v14 = vrot.slane %v144_v57, 2  ;;  %v150_v49 = vld [vmem:[#allocation2 + $0x80] sm:$0xff]  ;;  %v95_v55 = vld [vmem:[%s1100_s0 + $0xd8] sm:$0xff]  ;;  %v97_v2 = vld [vmem:[%s1100_s0 + $0xe8] sm:$0xff] }
  0x48   :  { %119 = vst.msk [vmem:[#allocation2 + $0xe1] sm:$0xff] %vm12_vm0, %v85_v63  ;;  %v537_v16 = vadd.f32 %v420_v7, %v374_v6  ;;  %v569_v17 = vadd.f32 %v535_v8, %v533_v45  ;;  %v260_v18 = vsel %vm242_vm2, %v258_v3, %v259_v9  ;;  %v261_v19 = vrot.slane %v145_v4, 1  ;;  %v151_v60 = vld [vmem:[#allocation2 + $0x88] sm:$0x3]  ;;  %v152_v7 = vld [vmem:[#allocation2 + $0x90] sm:$0xff] }
  0x49   :  { %120 = vst.msk [vmem:[#allocation2 + $0xf1] sm:$0xff] %vm12_vm0, %v86_v5  ;;  %v600_v22 = vadd.f32 %v568_v12, %v536_v11  ;;  %v375_v23 = vadd.f32 %v260_v18, %v143_v51  ;;  %v423_v24 = vsel %vm405_vm3, %v421_v13, %v422_v14  ;;  %v570_v25 = vadd.f32 %v536_v11, %v534_v1  ;;  %v99_v13 = vld [vmem:[%s1100_s0 + $0xf8] sm:$0xff] }
  0x4a   :  { %121 = vst.msk [vmem:[#allocation2 + $0xf9] sm:$0xff] %vm12_vm0, %v87_v10  ;;  %v601_v28 = vadd.f32 %v569_v17, %v537_v16  ;;  %v262_v29 = vsel %vm242_vm2, %v259_v9, %v261_v19  ;;  %v424_v30 = vrot.slane %v145_v4, 2  ;;  %v571_v31 = vadd.f32 %v537_v16, %v535_v8  ;;  %v98_v8 = vld [vmem:[%s1100_s0 + $0xf0] sm:$0xff]  ;;  %v153_v18 = vld [vmem:[#allocation2 + $0x98] sm:$0xff] }
  0x4b   :  { %122 = vst.msk [vmem:[#allocation2 + $0x109] sm:$0xff] %vm12_vm0, %v88_v15  ;;  %v874_v34 = vmul.f32 0.11111111, %v600_v22  ;;  %v538_v35 = vadd.f32 %v423_v24, %v375_v23  ;;  %v376_v36 = vadd.f32 %v262_v29, %v144_v57  ;;  %v263_v37 = vrot.slane %v146_v20, 1 }
  0x4c   :  { %123 = vst.msk [vmem:[#allocation2 + $0x111] sm:$0xff] %vm12_vm0, %v89_v21  ;;  %v880_v40 = vmul.f32 0.11111111, %v601_v28  ;;  %v425_v41 = vsel %vm405_vm3, %v422_v14, %v424_v30  ;;  %v264_v42 = vrot.slane %v147_v26, 1  ;;  %v426_v43 = vrot.slane %v146_v20, 2 }
  0x4d   :  { %124 = vst.msk [vmem:[#allocation2 + $0x121] sm:$0xff] %vm12_vm0, %v90_v27  ;;  %v602_v45 = vadd.f32 %v570_v25, %v538_v35  ;;  %v539_v46 = vadd.f32 %v425_v41, %v376_v36  ;;  %v427_v47 = vrot.slane %v147_v26, 2  ;;  %v572_v48 = vadd.f32 %v538_v35, %v536_v11  ;;  %v154_v27 = vld [vmem:[#allocation2 + $0xa0] sm:$0x3] }
  0x4e   :  { %125 = vst.msk [vmem:[#allocation2 + $0x129] sm:$0xff] %vm12_vm0, %v91_v33  ;;  %v265_v51 = vsel %vm242_vm2, %v263_v37, %v264_v42  ;;  %v266_v52 = vrot.slane %v148_v32, 1  ;;  %v429_v53 = vrot.slane %v148_v32, 2  ;;  %v268_v54 = vrot.slane %v149_v38, 1  ;;  %v155_v37 = vld [vmem:[#allocation2 + $0xa8] sm:$0xff] }
  0x4f   :  { %126 = vst.msk [vmem:[#allocation2 + $0x139] sm:$0xff] %vm12_vm0, %v92_v39  ;;  %v634_v56 = vmul.f32 0.11111111, %v602_v45  ;;  %v603_v57 = vadd.f32 %v571_v31, %v539_v46  ;;  %v377_v58 = vadd.f32 %v265_v51, %v146_v20  ;;  %v428_v59 = vsel %vm405_vm3, %v426_v43, %v427_v47 }
  0x50   :  { %127 = vst.msk [vmem:[#allocation2 + $0x141] sm:$0xff] %vm12_vm0, %v93_v44  ;;  %v267_v62 = vsel %vm242_vm2, %v264_v42, %v266_v52  ;;  %v430_v63 = vsel %vm405_vm3, %v427_v47, %v429_v53  ;;  %v573_v0 = vadd.f32 %v539_v46, %v537_v16  ;;  %v269_v1 = vrot.slane %v150_v49, 1  ;;  %v157_v47 = vld [vmem:[#allocation2 + $0xb8] sm:$0x3] }
  0x51   :  { %128 = vst.msk [vmem:[#allocation2 + $0x151] sm:$0xff] %vm12_vm0, %v94_v50  ;;  %v635_v3 = vmul.f32 0.11111111, %v603_v57  ;;  %v540_v4 = vadd.f32 %v428_v59, %v377_v58  ;;  %v378_v5 = vadd.f32 %v267_v62, %v147_v26  ;;  %v431_v6 = vrot.slane %v149_v38, 2 }
  0x52   :  { %129 = vst.msk [vmem:[#allocation2 + $0x159] sm:$0xff] %vm12_vm0, %v95_v55  ;;  %v270_v9 = vsel %vm242_vm2, %v268_v54, %v269_v1  ;;  %v432_v10 = vrot.slane %v150_v49, 2  ;;  %v271_v11 = vrot.slane %v151_v60, 1  ;;  %v434_v12 = vrot.slane %v151_v60, 2  ;;  %v158_v55 = vld [vmem:[#allocation2 + $0xc0] sm:$0xff] }
  0x53   :  { %130 = vst.msk [vmem:[#allocation2 + $0x169] sm:$0xff] %vm12_vm0, %v96_v61  ;;  %v604_v14 = vadd.f32 %v572_v48, %v540_v4  ;;  %v541_v15 = vadd.f32 %v430_v63, %v378_v5  ;;  %v379_v16 = vadd.f32 %v270_v9, %v149_v38  ;;  %v574_v17 = vadd.f32 %v540_v4, %v538_v35  ;;  %v156_v38 = vld [vmem:[#allocation2 + $0xb0] sm:$0xff] }
  0x54   :  { %131 = vst.msk [vmem:[#allocation2 + $0x171] sm:$0xff] %vm12_vm0, %v97_v2  ;;  %v433_v19 = vsel %vm405_vm3, %v431_v6, %v432_v10  ;;  %v272_v20 = vsel %vm242_vm2, %v269_v1, %v271_v11  ;;  %v435_v21 = vsel %vm405_vm3, %v432_v10, %v434_v12  ;;  %v273_v22 = vrot.slane %v152_v7, 1  ;;  %v160_v9 = vld [vmem:[#allocation2 + $0xd0] sm:$0x3] }
  0x55   :  { %132 = vst.msk [vmem:[#allocation2 + $0x181] sm:$0xff] %vm12_vm0, %v98_v8  ;;  %v636_v23 = vmul.f32 0.11111111, %v604_v14  ;;  %v605_v24 = vadd.f32 %v573_v0, %v541_v15  ;;  %v542_v25 = vadd.f32 %v433_v19, %v379_v16  ;;  %v380_v26 = vadd.f32 %v272_v20, %v150_v49  ;;  %v159_v0 = vld [vmem:[#allocation2 + $0xc8] sm:$0xff]  ;;  %v162_v19 = vld [vmem:[#allocation2 + $0xe0] sm:$0xff] }
  0x56   :  { %133 = vst.msk [vmem:[#allocation2 + $0x189] sm:$0xff] %vm12_vm0, %v99_v13  ;;  %v575_v28 = vadd.f32 %v541_v15, %v539_v46  ;;  %v274_v29 = vrot.slane %v153_v18, 1  ;;  %v436_v30 = vrot.slane %v152_v7, 2  ;;  %v437_v31 = vrot.slane %v153_v18, 2 }
  0x57   :  { %664 = vst.msk [vmem:[%s1101_s1] sm:$0xff] %vm12_vm0, %v874_v34  ;;  %v637_v32 = vmul.f32 0.11111111, %v605_v24  ;;  %v606_v33 = vadd.f32 %v574_v17, %v542_v25  ;;  %v543_v35 = vadd.f32 %v435_v21, %v380_v26  ;;  %v576_v36 = vadd.f32 %v542_v25, %v540_v4 }
  0x58   :  { %665 = vst.msk [vmem:[%s1101_s1 + $0x8] sm:$0xff] %vm12_vm0, %v880_v40  ;;  %v275_v39 = vsel %vm242_vm2, %v273_v22, %v274_v29  ;;  %v438_v41 = vsel %vm405_vm3, %v436_v30, %v437_v31  ;;  %v276_v42 = vrot.slane %v154_v27, 1  ;;  %v439_v43 = vrot.slane %v154_v27, 2 }
  0x59   :  { %666 = vst.msk [vmem:[%s1101_s1 + $0x10] sm:$0xff] %vm12_vm0, %v634_v56  ;;  %v638_v34 = vmul.f32 0.11111111, %v606_v33  ;;  %v607_v44 = vadd.f32 %v575_v28, %v543_v35  ;;  %v381_v45 = vadd.f32 %v275_v39, %v152_v7  ;;  %v577_v46 = vadd.f32 %v543_v35, %v541_v15  ;;  %v163_v28 = vld [vmem:[#allocation2 + $0xe8] sm:$0x3] }
  0x5a   :  { %667 = vst.msk [vmem:[%s1101_s1 + $0x18] sm:$0xff] %vm12_vm0, %v635_v3  ;;  %v277_v40 = vsel %vm242_vm2, %v274_v29, %v276_v42  ;;  %v440_v48 = vsel %vm405_vm3, %v437_v31, %v439_v43  ;;  %v278_v49 = vrot.slane %v155_v37, 1  ;;  %v279_v50 = vrot.slane %v156_v38, 1 }
  0x5b   :  { %668 = vst.msk [vmem:[%s1101_s1 + $0x20] sm:$0xff] %vm12_vm0, %v636_v23  ;;  %v639_v51 = vmul.f32 0.11111111, %v607_v44  ;;  %v544_v52 = vadd.f32 %v438_v41, %v381_v45  ;;  %v382_v53 = vadd.f32 %v277_v40, %v153_v18  ;;  %v441_v54 = vrot.slane %v155_v37, 2  ;;  %v161_v18 = vld [vmem:[#allocation2 + $0xd8] sm:$0xff] }
  0x5c   :  { %669 = vst.msk [vmem:[%s1101_s1 + $0x28] sm:$0xff] %vm12_vm0, %v637_v32  ;;  %v280_v56 = vsel %vm242_vm2, %v278_v49, %v279_v50  ;;  %v442_v57 = vrot.slane %v156_v38, 2  ;;  %v281_v58 = vrot.slane %v157_v47, 1  ;;  %v444_v59 = vrot.slane %v157_v47, 2  ;;  %v165_v47 = vld [vmem:[#allocation2 + $0xf8] sm:$0xff] }
  0x5d   :  { %670 = vst.msk [vmem:[%s1101_s1 + $0x30] sm:$0xff] %vm12_vm0, %v638_v34  ;;  %v608_v60 = vadd.f32 %v576_v36, %v544_v52  ;;  %v545_v61 = vadd.f32 %v440_v48, %v382_v53  ;;  %v383_v62 = vadd.f32 %v280_v56, %v155_v37  ;;  %v578_v63 = vadd.f32 %v544_v52, %v542_v25 }
  0x5e   :  { %671 = vst.msk [vmem:[%s1101_s1 + $0x38] sm:$0xff] %vm12_vm0, %v639_v51  ;;  %v443_v1 = vsel %vm405_vm3, %v441_v54, %v442_v57  ;;  %v282_v2 = vsel %vm242_vm2, %v279_v50, %v281_v58  ;;  %v445_v3 = vsel %vm405_vm3, %v442_v57, %v444_v59  ;;  %v283_v4 = vrot.slane %v158_v55, 1 }
  0x5f   :  { %v640_v5 = vmul.f32 0.11111111, %v608_v60  ;;  %v609_v6 = vadd.f32 %v577_v46, %v545_v61  ;;  %v546_v7 = vadd.f32 %v443_v1, %v383_v62  ;;  %v384_v8 = vadd.f32 %v282_v2, %v156_v38  ;;  %v164_v38 = vld [vmem:[#allocation2 + $0xf0] sm:$0xff] }
  0x60   :  { %v579_v10 = vadd.f32 %v545_v61, %v543_v35  ;;  %v284_v11 = vrot.slane %v159_v0, 1  ;;  %v446_v12 = vrot.slane %v158_v55, 2  ;;  %v447_v13 = vrot.slane %v159_v0, 2  ;;  %v168_v1 = vld [vmem:[#allocation2 + $0x110] sm:$0xff] }
  0x61   :  { %672 = vst.msk [vmem:[%s1101_s1 + $0x40] sm:$0xff] %vm12_vm0, %v640_v5  ;;  %v641_v14 = vmul.f32 0.11111111, %v609_v6  ;;  %v610_v15 = vadd.f32 %v578_v63, %v546_v7  ;;  %v547_v16 = vadd.f32 %v445_v3, %v384_v8  ;;  %v580_v17 = vadd.f32 %v546_v7, %v544_v52 }
  0x62   :  { %v285_v20 = vsel %vm242_vm2, %v283_v4, %v284_v11  ;;  %v448_v21 = vsel %vm405_vm3, %v446_v12, %v447_v13  ;;  %v286_v22 = vrot.slane %v160_v9, 1  ;;  %v449_v23 = vrot.slane %v160_v9, 2 }
  0x63   :  { %673 = vst.msk [vmem:[%s1101_s1 + $0x48] sm:$0xff] %vm12_vm0, %v641_v14  ;;  %v642_v24 = vmul.f32 0.11111111, %v610_v15  ;;  %v611_v25 = vadd.f32 %v579_v10, %v547_v16  ;;  %v385_v26 = vadd.f32 %v285_v20, %v158_v55  ;;  %v581_v27 = vadd.f32 %v547_v16, %v545_v61  ;;  %v166_v55 = vld [vmem:[#allocation2 + $0x100] sm:$0x3] }
  0x64   :  { %v287_v29 = vsel %vm242_vm2, %v284_v11, %v286_v22  ;;  %v450_v30 = vsel %vm405_vm3, %v447_v13, %v449_v23  ;;  %v288_v31 = vrot.slane %v161_v18, 1  ;;  %v289_v32 = vrot.slane %v162_v19, 1  ;;  %v169_v10 = vld [vmem:[#allocation2 + $0x118] sm:$0x3] }
  0x65   :  { %674 = vst.msk [vmem:[%s1101_s1 + $0x50] sm:$0xff] %vm12_vm0, %v642_v24  ;;  %v643_v33 = vmul.f32 0.11111111, %v611_v25  ;;  %v548_v35 = vadd.f32 %v448_v21, %v385_v26  ;;  %v386_v36 = vadd.f32 %v287_v29, %v159_v0  ;;  %v451_v37 = vrot.slane %v161_v18, 2  ;;  %v167_v0 = vld [vmem:[#allocation2 + $0x108] sm:$0xff] }
  0x66   :  { %v290_v39 = vsel %vm242_vm2, %v288_v31, %v289_v32  ;;  %v452_v41 = vrot.slane %v162_v19, 2  ;;  %v291_v42 = vrot.slane %v163_v28, 1  ;;  %v454_v43 = vrot.slane %v163_v28, 2  ;;  %v171_v28 = vld [vmem:[#allocation2 + $0x128] sm:$0xff] }
  0x67   :  { %675 = vst.msk [vmem:[%s1101_s1 + $0x58] sm:$0xff] %vm12_vm0, %v643_v33  ;;  %v612_v34 = vadd.f32 %v580_v17, %v548_v35  ;;  %v549_v44 = vadd.f32 %v450_v30, %v386_v36  ;;  %v387_v45 = vadd.f32 %v290_v39, %v161_v18  ;;  %v582_v46 = vadd.f32 %v548_v35, %v546_v7 }
  0x68   :  { %v453_v40 = vsel %vm405_vm3, %v451_v37, %v452_v41  ;;  %v292_v48 = vsel %vm242_vm2, %v289_v32, %v291_v42  ;;  %v455_v49 = vsel %vm405_vm3, %v452_v41, %v454_v43  ;;  %v293_v50 = vrot.slane %v164_v38, 1 }
  0x69   :  { %v644_v51 = vmul.f32 0.11111111, %v612_v34  ;;  %v613_v52 = vadd.f32 %v581_v27, %v549_v44  ;;  %v550_v53 = vadd.f32 %v453_v40, %v387_v45  ;;  %v388_v54 = vadd.f32 %v292_v48, %v162_v19  ;;  %v170_v19 = vld [vmem:[#allocation2 + $0x120] sm:$0xff] }
  0x6a   :  { %v583_v56 = vadd.f32 %v549_v44, %v547_v16  ;;  %v294_v57 = vrot.slane %v165_v47, 1  ;;  %v456_v58 = vrot.slane %v164_v38, 2  ;;  %v457_v59 = vrot.slane %v165_v47, 2  ;;  %v174_v40 = vld [vmem:[#allocation2 + $0x140] sm:$0xff] }
  0x6b   :  { %676 = vst.msk [vmem:[%s1101_s1 + $0x60] sm:$0xff] %vm12_vm0, %v644_v51  ;;  %v645_v60 = vmul.f32 0.11111111, %v613_v52  ;;  %v614_v61 = vadd.f32 %v582_v46, %v550_v53  ;;  %v551_v62 = vadd.f32 %v455_v49, %v388_v54  ;;  %v584_v63 = vadd.f32 %v550_v53, %v548_v35 }
  0x6c   :  { %v295_v2 = vsel %vm242_vm2, %v293_v50, %v294_v57  ;;  %v458_v3 = vsel %vm405_vm3, %v456_v58, %v457_v59  ;;  %v296_v4 = vrot.slane %v166_v55, 1  ;;  %v459_v5 = vrot.slane %v166_v55, 2 }
  0x6d   :  { %677 = vst.msk [vmem:[%s1101_s1 + $0x68] sm:$0xff] %vm12_vm0, %v645_v60  ;;  %v646_v6 = vmul.f32 0.11111111, %v614_v61  ;;  %v615_v7 = vadd.f32 %v583_v56, %v551_v62  ;;  %v389_v8 = vadd.f32 %v295_v2, %v164_v38  ;;  %v585_v9 = vadd.f32 %v551_v62, %v549_v44  ;;  %v172_v38 = vld [vmem:[#allocation2 + $0x130] sm:$0x3] }
  0x6e   :  { %v297_v11 = vsel %vm242_vm2, %v294_v57, %v296_v4  ;;  %v460_v12 = vsel %vm405_vm3, %v457_v59, %v459_v5  ;;  %v298_v13 = vrot.slane %v167_v0, 1  ;;  %v299_v14 = vrot.slane %v168_v1, 1  ;;  %v175_v56 = vld [vmem:[#allocation2 + $0x148] sm:$0x3] }
  0x6f   :  { %678 = vst.msk [vmem:[%s1101_s1 + $0x70] sm:$0xff] %vm12_vm0, %v646_v6  ;;  %v647_v15 = vmul.f32 0.11111111, %v615_v7  ;;  %v552_v16 = vadd.f32 %v458_v3, %v389_v8  ;;  %v390_v17 = vadd.f32 %v297_v11, %v165_v47  ;;  %v461_v18 = vrot.slane %v167_v0, 2  ;;  %v173_v47 = vld [vmem:[#allocation2 + $0x138] sm:$0xff] }
  0x70   :  { %v300_v20 = vsel %vm242_vm2, %v298_v13, %v299_v14  ;;  %v462_v21 = vrot.slane %v168_v1, 2  ;;  %v301_v22 = vrot.slane %v169_v10, 1  ;;  %v464_v23 = vrot.slane %v169_v10, 2  ;;  %v177_v10 = vld [vmem:[#allocation2 + $0x158] sm:$0xff] }
  0x71   :  { %679 = vst.msk [vmem:[%s1101_s1 + $0x78] sm:$0xff] %vm12_vm0, %v647_v15  ;;  %v616_v24 = vadd.f32 %v584_v63, %v552_v16  ;;  %v553_v25 = vadd.f32 %v460_v12, %v390_v17  ;;  %v391_v26 = vadd.f32 %v300_v20, %v167_v0  ;;  %v586_v27 = vadd.f32 %v552_v16, %v550_v53 }
  0x72   :  { %v463_v29 = vsel %vm405_vm3, %v461_v18, %v462_v21  ;;  %v302_v30 = vsel %vm242_vm2, %v299_v14, %v301_v22  ;;  %v465_v31 = vsel %vm405_vm3, %v462_v21, %v464_v23  ;;  %v303_v32 = vrot.slane %v170_v19, 1 }
  0x73   :  { %v648_v33 = vmul.f32 0.11111111, %v616_v24  ;;  %v617_v35 = vadd.f32 %v585_v9, %v553_v25  ;;  %v554_v36 = vadd.f32 %v463_v29, %v391_v26  ;;  %v392_v37 = vadd.f32 %v302_v30, %v168_v1  ;;  %v176_v1 = vld [vmem:[#allocation2 + $0x150] sm:$0xff] }
  0x74   :  { %v587_v39 = vadd.f32 %v553_v25, %v551_v62  ;;  %v304_v41 = vrot.slane %v171_v28, 1  ;;  %v466_v42 = vrot.slane %v170_v19, 2  ;;  %v467_v43 = vrot.slane %v171_v28, 2  ;;  %v180_v29 = vld [vmem:[#allocation2 + $0x170] sm:$0xff] }
  0x75   :  { %680 = vst.msk [vmem:[%s1101_s1 + $0x80] sm:$0xff] %vm12_vm0, %v648_v33  ;;  %v649_v34 = vmul.f32 0.11111111, %v617_v35  ;;  %v618_v44 = vadd.f32 %v586_v27, %v554_v36  ;;  %v555_v45 = vadd.f32 %v465_v31, %v392_v37  ;;  %v588_v46 = vadd.f32 %v554_v36, %v552_v16 }
  0x76   :  { %v305_v48 = vsel %vm242_vm2, %v303_v32, %v304_v41  ;;  %v468_v49 = vsel %vm405_vm3, %v466_v42, %v467_v43  ;;  %v306_v50 = vrot.slane %v172_v38, 1  ;;  %v469_v51 = vrot.slane %v172_v38, 2 }
  0x77   :  { %681 = vst.msk [vmem:[%s1101_s1 + $0x88] sm:$0xff] %vm12_vm0, %v649_v34  ;;  %v650_v52 = vmul.f32 0.11111111, %v618_v44  ;;  %v619_v53 = vadd.f32 %v587_v39, %v555_v45  ;;  %v393_v54 = vadd.f32 %v305_v48, %v170_v19  ;;  %v589_v55 = vadd.f32 %v555_v45, %v553_v25  ;;  %v178_v19 = vld [vmem:[#allocation2 + $0x160] sm:$0x3] }
  0x78   :  { %v307_v57 = vsel %vm242_vm2, %v304_v41, %v306_v50  ;;  %v470_v58 = vsel %vm405_vm3, %v467_v43, %v469_v51  ;;  %v308_v59 = vrot.slane %v173_v47, 1  ;;  %v309_v60 = vrot.slane %v174_v40, 1  ;;  %v181_v39 = vld [vmem:[#allocation2 + $0x178] sm:$0x3] }
  0x79   :  { %682 = vst.msk [vmem:[%s1101_s1 + $0x90] sm:$0xff] %vm12_vm0, %v650_v52  ;;  %v651_v61 = vmul.f32 0.11111111, %v619_v53  ;;  %v556_v62 = vadd.f32 %v468_v49, %v393_v54  ;;  %v394_v63 = vadd.f32 %v307_v57, %v171_v28  ;;  %v471_v0 = vrot.slane %v173_v47, 2  ;;  %v179_v28 = vld [vmem:[#allocation2 + $0x168] sm:$0xff] }
  0x7a   :  { %v310_v2 = vsel %vm242_vm2, %v308_v59, %v309_v60  ;;  %v472_v3 = vrot.slane %v174_v40, 2  ;;  %v311_v4 = vrot.slane %v175_v56, 1  ;;  %v474_v5 = vrot.slane %v175_v56, 2  ;;  %v183_v56 = vld [vmem:[#allocation2 + $0x188] sm:$0xff] }
  0x7b   :  { %683 = vst.msk [vmem:[%s1101_s1 + $0x98] sm:$0xff] %vm12_vm0, %v651_v61  ;;  %v620_v6 = vadd.f32 %v588_v46, %v556_v62  ;;  %v557_v7 = vadd.f32 %v470_v58, %v394_v63  ;;  %v395_v8 = vadd.f32 %v310_v2, %v173_v47  ;;  %v590_v9 = vadd.f32 %v556_v62, %v554_v36 }
  0x7c   :  { %v473_v11 = vsel %vm405_vm3, %v471_v0, %v472_v3  ;;  %v312_v12 = vsel %vm242_vm2, %v309_v60, %v311_v4  ;;  %v475_v13 = vsel %vm405_vm3, %v472_v3, %v474_v5  ;;  %v313_v14 = vrot.slane %v176_v1, 1 }
  0x7d   :  { %v652_v15 = vmul.f32 0.11111111, %v620_v6  ;;  %v621_v16 = vadd.f32 %v589_v55, %v557_v7  ;;  %v558_v17 = vadd.f32 %v473_v11, %v395_v8  ;;  %v396_v18 = vadd.f32 %v312_v12, %v174_v40  ;;  %v182_v40 = vld [vmem:[#allocation2 + $0x180] sm:$0xff] }
  0x7e   :  { %v591_v20 = vadd.f32 %v557_v7, %v555_v45  ;;  %v314_v21 = vrot.slane %v177_v10, 1  ;;  %v476_v22 = vrot.slane %v176_v1, 2  ;;  %v477_v23 = vrot.slane %v177_v10, 2  ;;  %v186_v11 = vld [vmem:[#allocation2 + $0x1a0] sm:$0xff] }
  0x7f   :  { %684 = vst.msk [vmem:[%s1101_s1 + $0xa0] sm:$0xff] %vm12_vm0, %v652_v15  ;;  %v653_v24 = vmul.f32 0.11111111, %v621_v16  ;;  %v622_v25 = vadd.f32 %v590_v9, %v558_v17  ;;  %v559_v26 = vadd.f32 %v475_v13, %v396_v18  ;;  %v592_v27 = vadd.f32 %v558_v17, %v556_v62 }
  0x80   :  { %v315_v30 = vsel %vm242_vm2, %v313_v14, %v314_v21  ;;  %v478_v31 = vsel %vm405_vm3, %v476_v22, %v477_v23  ;;  %v316_v32 = vrot.slane %v178_v19, 1  ;;  %v479_v33 = vrot.slane %v178_v19, 2 }
  0x81   :  { %685 = vst.msk [vmem:[%s1101_s1 + $0xa8] sm:$0xff] %vm12_vm0, %v653_v24  ;;  %v654_v35 = vmul.f32 0.11111111, %v622_v25  ;;  %v623_v36 = vadd.f32 %v591_v20, %v559_v26  ;;  %v397_v37 = vadd.f32 %v315_v30, %v176_v1  ;;  %v593_v38 = vadd.f32 %v559_v26, %v557_v7  ;;  %v184_v1 = vld [vmem:[#allocation2 + $0x190] sm:$0x3] }
  0x82   :  { %v317_v41 = vsel %vm242_vm2, %v314_v21, %v316_v32  ;;  %v480_v42 = vsel %vm405_vm3, %v477_v23, %v479_v33  ;;  %v318_v43 = vrot.slane %v179_v28, 1  ;;  %v319_v34 = vrot.slane %v180_v29, 1  ;;  %v187_v20 = vld [vmem:[#allocation2 + $0x1a8] sm:$0x3] }
  0x83   :  { %686 = vst.msk [vmem:[%s1101_s1 + $0xb0] sm:$0xff] %vm12_vm0, %v654_v35  ;;  %v655_v44 = vmul.f32 0.11111111, %v623_v36  ;;  %v560_v45 = vadd.f32 %v478_v31, %v397_v37  ;;  %v398_v46 = vadd.f32 %v317_v41, %v177_v10  ;;  %v481_v47 = vrot.slane %v179_v28, 2  ;;  %v185_v10 = vld [vmem:[#allocation2 + $0x198] sm:$0xff] }
  0x84   :  { %v320_v48 = vsel %vm242_vm2, %v318_v43, %v319_v34  ;;  %v482_v49 = vrot.slane %v180_v29, 2  ;;  %v321_v50 = vrot.slane %v181_v39, 1  ;;  %v484_v51 = vrot.slane %v181_v39, 2 }
  0x85   :  { %687 = vst.msk [vmem:[%s1101_s1 + $0xb8] sm:$0xff] %vm12_vm0, %v655_v44  ;;  %v624_v52 = vadd.f32 %v592_v27, %v560_v45  ;;  %v561_v53 = vadd.f32 %v480_v42, %v398_v46  ;;  %v399_v54 = vadd.f32 %v320_v48, %v179_v28  ;;  %v594_v55 = vadd.f32 %v560_v45, %v558_v17 }
  0x86   :  { %v483_v57 = vsel %vm405_vm3, %v481_v47, %v482_v49  ;;  %v322_v58 = vsel %vm242_vm2, %v319_v34, %v321_v50  ;;  %v485_v59 = vsel %vm405_vm3, %v482_v49, %v484_v51  ;;  %v323_v60 = vrot.slane %v182_v40, 1 }
  0x87   :  { %v656_v61 = vmul.f32 0.11111111, %v624_v52  ;;  %v625_v62 = vadd.f32 %v593_v38, %v561_v53  ;;  %v562_v63 = vadd.f32 %v483_v57, %v399_v54  ;;  %v400_v0 = vadd.f32 %v322_v58, %v180_v29 }
  0x88   :  { %v595_v2 = vadd.f32 %v561_v53, %v559_v26  ;;  %v324_v3 = vrot.slane %v183_v56, 1  ;;  %v486_v4 = vrot.slane %v182_v40, 2  ;;  %v487_v5 = vrot.slane %v183_v56, 2 }
  0x89   :  { %688 = vst.msk [vmem:[%s1101_s1 + $0xc0] sm:$0xff] %vm12_vm0, %v656_v61  ;;  %v657_v6 = vmul.f32 0.11111111, %v625_v62  ;;  %v626_v7 = vadd.f32 %v594_v55, %v562_v63  ;;  %v563_v8 = vadd.f32 %v485_v59, %v400_v0  ;;  %v596_v9 = vadd.f32 %v562_v63, %v560_v45 }
  0x8a   :  { %v325_v12 = vsel %vm242_vm2, %v323_v60, %v324_v3  ;;  %v488_v13 = vsel %vm405_vm3, %v486_v4, %v487_v5  ;;  %v326_v14 = vrot.slane %v184_v1, 1  ;;  %v489_v15 = vrot.slane %v184_v1, 2 }
  0x8b   :  { %689 = vst.msk [vmem:[%s1101_s1 + $0xc8] sm:$0xff] %vm12_vm0, %v657_v6  ;;  %v658_v16 = vmul.f32 0.11111111, %v626_v7  ;;  %v627_v17 = vadd.f32 %v595_v2, %v563_v8  ;;  %v401_v18 = vadd.f32 %v325_v12, %v182_v40  ;;  %v597_v19 = vadd.f32 %v563_v8, %v561_v53 }
  0x8c   :  { %v327_v21 = vsel %vm242_vm2, %v324_v3, %v326_v14  ;;  %v490_v22 = vsel %vm405_vm3, %v487_v5, %v489_v15  ;;  %v328_v23 = vrot.slane %v185_v10, 1  ;;  %v329_v24 = vrot.slane %v186_v11, 1 }
  0x8d   :  { %690 = vst.msk [vmem:[%s1101_s1 + $0xd0] sm:$0xff] %vm12_vm0, %v658_v16  ;;  %v659_v25 = vmul.f32 0.11111111, %v627_v17  ;;  %v564_v26 = vadd.f32 %v488_v13, %v401_v18  ;;  %v402_v27 = vadd.f32 %v327_v21, %v183_v56  ;;  %v491_v28 = vrot.slane %v185_v10, 2 }
  0x8e   :  { %v330_v29 = vsel %vm242_vm2, %v328_v23, %v329_v24  ;;  %v492_v30 = vrot.slane %v186_v11, 2  ;;  %v331_v31 = vrot.slane %v187_v20, 1  ;;  %v494_v32 = vrot.slane %v187_v20, 2 }
  0x8f   :  { %691 = vst.msk [vmem:[%s1101_s1 + $0xd8] sm:$0xff] %vm12_vm0, %v659_v25  ;;  %v628_v33 = vadd.f32 %v596_v9, %v564_v26  ;;  %v565_v35 = vadd.f32 %v490_v22, %v402_v27  ;;  %v403_v36 = vadd.f32 %v330_v29, %v185_v10  ;;  %v598_v37 = vadd.f32 %v564_v26, %v562_v63 }
  0x90   :  { %v493_v38 = vsel %vm405_vm3, %v491_v28, %v492_v30  ;;  %v332_v39 = vsel %vm242_vm2, %v329_v24, %v331_v31  ;;  %v495_v41 = vsel %vm405_vm3, %v492_v30, %v494_v32 }
  0x91   :  { %v660_v42 = vmul.f32 0.11111111, %v628_v33  ;;  %v629_v43 = vadd.f32 %v597_v19, %v565_v35  ;;  %v566_v34 = vadd.f32 %v493_v38, %v403_v36  ;;  %v404_v44 = vadd.f32 %v332_v39, %v186_v11 }
  0x92   :  { %v599_v45 = vadd.f32 %v565_v35, %v563_v8 }
  0x93   :  { %692 = vst.msk [vmem:[%s1101_s1 + $0xe0] sm:$0xff] %vm12_vm0, %v660_v42  ;;  %v661_v46 = vmul.f32 0.11111111, %v629_v43  ;;  %v630_v47 = vadd.f32 %v598_v37, %v566_v34  ;;  %v567_v40 = vadd.f32 %v495_v41, %v404_v44 }
  0x95   :  { %693 = vst.msk [vmem:[%s1101_s1 + $0xe8] sm:$0xff] %vm12_vm0, %v661_v46  ;;  %v662_v48 = vmul.f32 0.11111111, %v630_v47  ;;  %v631_v49 = vadd.f32 %v599_v45, %v567_v40 }
  0x97   :  { %694 = vst.msk [vmem:[%s1101_s1 + $0xf0] sm:$0xff] %vm12_vm0, %v662_v48  ;;  %v663_v50 = vmul.f32 0.11111111, %v631_v49 }
  0x99   :  { %695 = vst.msk [vmem:[%s1101_s1 + $0xf8] sm:$0xff] %vm12_vm0, %v663_v50 }

</bundles_post_ra>
